<compile_context>
chip_gen: v7x
topology: tpu7x:2x2x1
jax: 0.10.0
libtpu: 0.0.40
codegen_flags: <defaults>
</compile_context>

<pallas_src>
import functools

import jax
import jax.numpy as jnp
import numpy as np
from jax import lax
from jax.experimental import pallas as pl
from jax.experimental.pallas import tpu as pltpu


def _round_up(v, m):
    return ((v + m - 1) // m) * m


def _cdiv(a, b):
    return (a + b - 1) // b


def _vmem_limit_bytes():
    """Generation-aware scoped-VMEM limit: half the physical VMEM, capped at 64 MiB."""
    try:
        cap = int(pltpu.get_tpu_info().vmem_capacity_bytes)
    except Exception:
        cap = 64 * 1024 * 1024          # conservative fallback (v7x-sized)
    return max(16 * 1024 * 1024, min(cap // 2, 64 * 1024 * 1024))


def _pick_tile(c_pad, rows_pad, b_pad, t_total, max_tile=8192):
    """Largest lane tile (multiple of 128) whose working set fits ~half the budget."""
    budget = _vmem_limit_bytes() // 2
    # per tuple-lane: double-buffered x-in, tup-out, packed params, seg (4 B each)
    # plus the in-kernel one-hot (b_pad rows) and the energy intermediate (c_pad rows)
    bytes_per_lane = 4 * (2 * (2 * c_pad + rows_pad + 1) + b_pad + c_pad)
    tile = max(128, min(int(budget // bytes_per_lane), max_tile))
    tile = (tile // 128) * 128
    tile = min(tile, _round_up(max(t_total, 1), 128))
    return tile


# ---------------------------------------------------------------------------
# In-kernel segment pooling: one-hot + MXU matmul (MXU is otherwise idle here)
# ---------------------------------------------------------------------------

def _pool_into(pooled_ref, e, seg, num_graphs_pad):
    """pooled[c, b] += sum_t e[c, t] * (seg[t] == b), via one dot_general."""
    ids = lax.broadcasted_iota(jnp.int32, (num_graphs_pad, e.shape[1]), 0)
    onehot = (ids == seg).astype(jnp.float32)                    # (B_pad, tile)
    pooled_ref[...] += lax.dot_general(
        e, onehot, (((1,), (1,)), ((), ())),
        preferred_element_type=jnp.float32)                      # (C_pad, B_pad)


# ---------------------------------------------------------------------------
# Pallas kernels
# ---------------------------------------------------------------------------

def _harmonic_kernel(params_ref, seg_ref, x_ref, *out_refs,
                     num_graphs_pad, write_tuples):
    """0.5 * k * (x - eq)^2 per tuple + segment pooling.  params rows: [k, eq, ...]."""
    if write_tuples:
        tup_ref, pooled_ref = out_refs
    else:
        (pooled_ref,) = out_refs

    @pl.when(pl.program_id(1) == 0)
    def _init():
        pooled_ref[...] = jnp.zeros_like(pooled_ref)

    k = params_ref[0:1, :]                                       # (1, tile)
    eq = params_ref[1:2, :]                                      # (1, tile)
    x = x_ref[...]                                               # (C_pad, tile)
    d = x - eq
    e = (0.5 * k) * (d * d)                                      # per-tuple energies
    if write_tuples:
        tup_ref[...] = e
    _pool_into(pooled_ref, e, seg_ref[...], num_graphs_pad)


def _torsion_kernel(params_ref, seg_ref, x_ref, *out_refs,
                    periodicity, offset, num_graphs_pad, write_tuples):
    """sum_n k_n cos(n*phi) (+ sum_n |k_n| if offset) per tuple + segment pooling.

    params rows: [k_1 .. k_P, precomputed sum|k_n| (offset row), 0-pad ...].
    cos(n*phi) via Chebyshev recurrence: one EUP cos + 2 VPU FMAs per harmonic.
    """
    if write_tuples:
        tup_ref, pooled_ref = out_refs
    else:
        (pooled_ref,) = out_refs

    @pl.when(pl.program_id(1) == 0)
    def _init():
        pooled_ref[...] = jnp.zeros_like(pooled_ref)

    x = x_ref[...]                                               # (C_pad, tile)
    c1 = jnp.cos(x)                                              # single transcendental
    e = params_ref[0:1, :] * c1
    cos_nm2 = jnp.ones_like(x)                                   # cos(0*x)
    cos_nm1 = c1                                                 # cos(1*x)
    for n in range(2, periodicity + 1):                          # static, unrolled
        cn = 2.0 * c1 * cos_nm1 - cos_nm2
        e = e + params_ref[n - 1:n, :] * cn
        cos_nm2, cos_nm1 = cos_nm1, cn
    if offset:
        e = e + params_ref[periodicity:periodicity + 1, :]       # precomputed sum|k_n|
    if write_tuples:
        tup_ref[...] = e
    _pool_into(pooled_ref, e, seg_ref[...], num_graphs_pad)


# ---------------------------------------------------------------------------
# Fused per-group wrapper (layout plumbing + single pallas_call per group)
# ---------------------------------------------------------------------------

def _fused_term_energy(kind, terms, num_graphs, *, offset_torsion=False,
                       compute_tuple_energies=True, conf_major_x=False,
                       num_slices=2, max_tile=8192):
    """kind in {'harmonic', 'torsion'}; terms is a list of per-level dicts.

    Returns a list of (pooled (B, C), tuple_energies (T, C) or None) per term.
    """
    n_terms = len(terms)
    Ts = [int(t['k'].shape[0]) for t in terms]
    T_total = sum(Ts)
    C = int(terms[0]['x'].shape[0] if conf_major_x else terms[0]['x'].shape[1])
    C_pad = _round_up(max(C, 1), 8)

    if kind == 'harmonic':
        P_max = 1
        rows = 2                               # k, eq
    else:
        P_max = max(int(t['k'].shape[1]) for t in terms)
        rows = P_max + 1                       # k_1..k_P, offset row
    rows_pad = _round_up(rows, 8)

    B_total = n_terms * num_graphs             # per-term graph-id offsets
    B_pad = _round_up(max(B_total, 1), 128)    # MXU lane width

    tile = _pick_tile(C_pad, rows_pad, B_pad, T_total, max_tile)
    tiles_total = _cdiv(max(T_total, 1), tile)
    n_slices = max(1, min(num_slices, tiles_total))   # >1 only helps v7x megacore
    tiles_per_slice = _cdiv(tiles_total, n_slices)
    T_pad = n_slices * tiles_per_slice * tile

    # ---- pack fused lane-major operands (padding carries k == 0 -> zero energy)
    xT = jnp.zeros((C_pad, T_pad), jnp.float32)
    seg = jnp.zeros((1, T_pad), jnp.int32)
    params = jnp.zeros((rows_pad, T_pad), jnp.float32)

    offs, off = [], 0
    for ti, t in enumerate(terms):
        Ti = Ts[ti]
        offs.append(off)
        x = t['x'].astype(jnp.float32)
        if not conf_major_x:
            x = x.T                            # (C, Ti); avoidable via conf_major_x=True
        xT = xT.at[:C, off:off + Ti].set(x)
        seg = seg.at[0, off:off + Ti].set(
            t['seg_ids'].astype(jnp.int32) + ti * num_graphs)
        if kind == 'harmonic':
            params = params.at[0, off:off + Ti].set(t['k'].astype(jnp.float32))
            params = params.at[1, off:off + Ti].set(t['eq'].astype(jnp.float32))
        else:
            kP = t['k'].astype(jnp.float32)    # (Ti, P_i), P_i <= P_max
            params = params.at[:kP.shape[1], off:off + Ti].set(kP.T)
            if offset_torsion:
                params = params.at[P_max, off:off + Ti].set(
                    jnp.sum(jnp.abs(kP), axis=1))
        off += Ti

    if kind == 'harmonic':
        kernel = functools.partial(_harmonic_kernel, num_graphs_pad=B_pad,
                                   write_tuples=compute_tuple_energies)
    else:
        kernel = functools.partial(_torsion_kernel, periodicity=P_max,
                                   offset=bool(offset_torsion),
                                   num_graphs_pad=B_pad,
                                   write_tuples=compute_tuple_energies)

    lane_idx = lambda s, i: (0, s * tiles_per_slice + i)
    pooled_shape = jax.ShapeDtypeStruct((n_slices, C_pad, B_pad), jnp.float32)
    pooled_spec = pl.BlockSpec((None, C_pad, B_pad), lambda s, i: (s, 0, 0))

    in_specs = [pl.BlockSpec((rows_pad, tile), lane_idx),   # packed params (1 DMA)
                pl.BlockSpec((1, tile), lane_idx),          # seg ids (int32)
                pl.BlockSpec((C_pad, tile), lane_idx)]      # x (conf-major)

    if compute_tuple_energies:
        out_shape = (jax.ShapeDtypeStruct((C_pad, T_pad), jnp.float32), pooled_shape)
        out_specs = (pl.BlockSpec((C_pad, tile), lane_idx), pooled_spec)
    else:
        out_shape = pooled_shape
        out_specs = pooled_spec

    res = pl.pallas_call(
        kernel,
        out_shape=out_shape,
        grid=(n_slices, tiles_per_slice),
        in_specs=in_specs,
        out_specs=out_specs,
        compiler_params=pltpu.CompilerParams(
            dimension_semantics=("parallel", "arbitrary"),
            vmem_limit_bytes=_vmem_limit_bytes()),
    )(params, seg, xT)

    if compute_tuple_energies:
        tup_full, pooled = res
    else:
        tup_full, pooled = None, res
    pooled = pooled.sum(axis=0)                              # combine per-slice partials

    results = []
    for ti in range(n_terms):
        # keep the [:C] slices: padded conformer sublanes hold garbage by design
        contrib = pooled[:C, ti * num_graphs:(ti + 1) * num_graphs].T     # (B, C)
        tup_i = None
        if compute_tuple_energies:
            # TODO(synk): keep conf-major (C, T) tuple energies downstream to skip this transpose.
            tup_i = tup_full[:C, offs[ti]:offs[ti] + Ts[ti]].T            # (T, C)
        results.append((contrib, tup_i))
    return results


# ---------------------------------------------------------------------------
# Energy.forward equivalent
# ---------------------------------------------------------------------------

TERM_TO_LEVEL = {'bond': 'n2', 'angle': 'n3', 'proper': 'n4', 'torsion': 'n4',
                 'improper': 'n4_improper'}
LEVEL_TO_TERM = {'n2': 'bond', 'n3': 'angle', 'n4': 'proper',
                 'n4_improper': 'improper'}


def energy_forward(graph, num_confs, num_graphs,
                   terms=('bond', 'angle', 'torsion', 'improper'),
                   offset_torsion=False, write_suffix='',
                   compute_tuple_energies=True, conf_major_x=False):
    """graph: dict level -> dict with 'k', ('eq',) 'x', 'seg_ids'.
    Returns a dict mirroring what Energy writes into the dgl graph."""
    levels = [TERM_TO_LEVEL[t] for t in terms]
    harmonic_levels = [l for l in ('n2', 'n3') if l in levels]
    torsion_levels = [l for l in ('n4', 'n4_improper') if l in levels]

    out = {}
    energy = jnp.zeros((num_graphs, num_confs), dtype=jnp.float32)

    def _emit(level_list, results):
        nonlocal energy
        for level, (contrib, tup) in zip(level_list, results):
            termname = LEVEL_TO_TERM[level]
            energy = energy + contrib
            out['energy_' + write_suffix + termname] = contrib
            if tup is not None:
                out[level + '/energy' + write_suffix] = tup

    if harmonic_levels:
        _emit(harmonic_levels, _fused_term_energy(
            'harmonic', [graph[l] for l in harmonic_levels], num_graphs,
            compute_tuple_energies=compute_tuple_energies,
            conf_major_x=conf_major_x))
    if torsion_levels:
        _emit(torsion_levels, _fused_term_energy(
            'torsion', [graph[l] for l in torsion_levels], num_graphs,
            offset_torsion=offset_torsion,
            compute_tuple_energies=compute_tuple_energies,
            conf_major_x=conf_major_x))

    out['energy' + write_suffix] = energy
    # TODO(synk): gradients w.r.t. xyz require InternalCoordinates (not provided).
    return out


# ---------------------------------------------------------------------------
# Pure-JAX reference (for a correctness check)
# ---------------------------------------------------------------------------

def _ref_harmonic(k, eq, x):
    return 0.5 * k[:, None] * jnp.square(x - eq[:, None])


def _ref_torsion(k, x, offset):
    P = k.shape[1]
    n = jnp.arange(1, P + 1, dtype=jnp.float32)[None, :, None]
    kk = k[:, :, None]
    e = kk * jnp.cos(n * x[:, None, :])
    if offset:
        e = jnp.abs(kk) + e
    return e.sum(axis=1)


def _ref_pool(e, seg_ids, num_graphs):
    return jnp.zeros((num_graphs, e.shape[1]), e.dtype).at[seg_ids].add(e)


def _ref_total(graph, B, offset_torsion):
    eb = _ref_harmonic(graph['n2']['k'], graph['n2']['eq'], graph['n2']['x'])
    ea = _ref_harmonic(graph['n3']['k'], graph['n3']['eq'], graph['n3']['x'])
    ep = _ref_torsion(graph['n4']['k'], graph['n4']['x'], offset_torsion)
    ei = _ref_torsion(graph['n4_improper']['k'], graph['n4_improper']['x'],
                      offset_torsion)
    total = (_ref_pool(eb, graph['n2']['seg_ids'], B)
             + _ref_pool(ea, graph['n3']['seg_ids'], B)
             + _ref_pool(ep, graph['n4']['seg_ids'], B)
             + _ref_pool(ei, graph['n4_improper']['seg_ids'], B))
    return total, eb, ea, ep, ei


# ---------------------------------------------------------------------------

if __name__ == "__main__":
    key = jax.random.PRNGKey(0)
    B, C = 2, 8                                  # num graphs in batch, num confs
    T_bond, T_angle, T_proper, T_improper = 16, 12, 10, 6
    P_proper, P_improper = 6, 3
    ks = jax.random.split(key, 10)

    def seg(T):  # first half of the tuples -> graph 0, rest -> graph 1
        return (jnp.arange(T) >= (T // 2)).astype(jnp.int32)

    graph = {
        'n2': dict(
            k=jax.random.uniform(ks[0], (T_bond,), minval=100., maxval=600.),
            eq=jax.random.uniform(ks[1], (T_bond,), minval=0.9, maxval=1.6),
            x=jax.random.uniform(ks[2], (T_bond, C), minval=0.9, maxval=1.7),
            seg_ids=seg(T_bond)),
        'n3': dict(
            k=jax.random.uniform(ks[3], (T_angle,), minval=50., maxval=150.),
            eq=jax.random.uniform(ks[4], (T_angle,), minval=1.7, maxval=2.2),
            x=jax.random.uniform(ks[5], (T_angle, C), minval=1.5, maxval=2.4),
            seg_ids=seg(T_angle)),
        'n4': dict(
            k=jax.random.normal(ks[6], (T_proper, P_proper)) * 2.0,
            x=jax.random.uniform(ks[7], (T_proper, C), minval=-np.pi, maxval=np.pi),
            seg_ids=seg(T_proper)),
        'n4_improper': dict(
            k=jax.random.normal(ks[8], (T_improper, P_improper)) * 2.0,
            x=jax.random.uniform(ks[9], (T_improper, C), minval=-np.pi, maxval=np.pi),
            seg_ids=seg(T_improper)),
    }

    for offset_torsion in (False, True):          # Energy.__init__ default is False
        out = energy_forward(graph, num_confs=C, num_graphs=B,
                             offset_torsion=offset_torsion)
        jax.block_until_ready(out['energy'])

        ref_total, eb, ea, ep, ei = _ref_total(graph, B, offset_torsion)

        np.testing.assert_allclose(np.asarray(out['energy']),
                                   np.asarray(ref_total), rtol=1e-4, atol=1e-2)
        np.testing.assert_allclose(np.asarray(out['energy_bond']),
                                   np.asarray(_ref_pool(eb, graph['n2']['seg_ids'], B)),
                                   rtol=1e-4, atol=1e-2)
        np.testing.assert_allclose(np.asarray(out['energy_proper']),
                                   np.asarray(_ref_pool(ep, graph['n4']['seg_ids'], B)),
                                   rtol=1e-4, atol=1e-2)
        np.testing.assert_allclose(np.asarray(out['n2/energy']), np.asarray(eb),
                                   rtol=1e-5, atol=1e-4)
        np.testing.assert_allclose(np.asarray(out['n3/energy']), np.asarray(ea),
                                   rtol=1e-5, atol=1e-4)
        np.testing.assert_allclose(np.asarray(out['n4/energy']), np.asarray(ep),
                                   rtol=1e-4, atol=1e-4)
        np.testing.assert_allclose(np.asarray(out['n4_improper/energy']),
                                   np.asarray(ei), rtol=1e-4, atol=1e-4)

    # Fast path: conf-major inputs (no wrapper transpose) + pooled energies only
    # (no per-tuple writeback) — semantics of the total energy are unchanged.
    graph_cm = {lvl: {**d, 'x': d['x'].T} for lvl, d in graph.items()}
    out_fast = energy_forward(graph_cm, num_confs=C, num_graphs=B,
                              offset_torsion=False,
                              compute_tuple_energies=False, conf_major_x=True)
    jax.block_until_ready(out_fast['energy'])
    ref_total0, *_ = _ref_total(graph, B, False)
    np.testing.assert_allclose(np.asarray(out_fast['energy']),
                               np.asarray(ref_total0), rtol=1e-4, atol=1e-2)

    print("KERNEL_OK")
</pallas_src>

<mosaic_0001>
module attributes {stable_mosaic.version = 11 : i64} {
  func.func @_harmonic_kernel(%arg0: i32, %arg1: i32, %arg2: memref<8x128xf32, #tpu.memory_space<vmem>>, %arg3: memref<1x128xi32, #tpu.memory_space<vmem>>, %arg4: memref<8x128xf32, #tpu.memory_space<vmem>>, %arg5: memref<8x128xf32, #tpu.memory_space<vmem>>, %arg6: memref<1x8x128xf32, #tpu.memory_space<vmem>>) attributes {dimension_semantics = [#tpu.dimension_semantics<parallel>, #tpu.dimension_semantics<arbitrary>], iteration_bounds = array<i64: 1, 1>, scalar_prefetch = 0 : i64, scratch_operands = 0 : i64, tpu.core_type = #tpu.core_type<tc>, window_params = [{transform_indices = @transform_0, window_bounds = array<i64: 8, 128>}, {transform_indices = @transform_1, window_bounds = array<i64: 1, 128>}, {transform_indices = @transform_2, window_bounds = array<i64: 8, 128>}, {transform_indices = @transform_3, window_bounds = array<i64: 8, 128>}, {transform_indices = @transform_4, window_bounds = array<i64: 1, 8, 128>}]} {
    %c0_i32 = arith.constant 0 : i32
    %0 = arith.cmpi eq, %arg1, %c0_i32 : i32
    %1 = arith.extui %0 : i1 to i32
    %c0_i32_0 = arith.constant 0 : i32
    %2 = arith.cmpi ne, %1, %c0_i32_0 : i32
    scf.if %2 {
      %cst_16 = arith.constant 0.000000e+00 : f32
      %27 = vector.broadcast %cst_16 : f32 to vector<8x128xf32>
      %c0_17 = arith.constant 0 : index
      %c0_18 = arith.constant 0 : index
      %c0_19 = arith.constant 0 : index
      %28 = vector.load %arg6[%c0_17, %c0_18, %c0_19] : memref<1x8x128xf32, #tpu.memory_space<vmem>>, vector<1x8x128xf32>
      %29 = vector.shape_cast %28 : vector<1x8x128xf32> to vector<8x128xf32>
      %30 = vector.shape_cast %27 : vector<8x128xf32> to vector<1x8x128xf32>
      tpu.vector_store %arg6[%c0_17, %c0_18, %c0_19], %30 {strides = array<i32>} : memref<1x8x128xf32, #tpu.memory_space<vmem>>, vector<1x8x128xf32>,
    } else {
    }
    %c0 = arith.constant 0 : index
    %c0_1 = arith.constant 0 : index
    %3 = vector.load %arg2[%c0, %c0_1] : memref<8x128xf32, #tpu.memory_space<vmem>>, vector<1x128xf32>
    %c1 = arith.constant 1 : index
    %c0_2 = arith.constant 0 : index
    %4 = vector.load %arg2[%c1, %c0_2] : memref<8x128xf32, #tpu.memory_space<vmem>>, vector<1x128xf32>
    %c0_3 = arith.constant 0 : index
    %c0_4 = arith.constant 0 : index
    %5 = vector.load %arg4[%c0_3, %c0_4] : memref<8x128xf32, #tpu.memory_space<vmem>>, vector<8x128xf32>
    %6 = vector.broadcast %4 : vector<1x128xf32> to vector<8x128xf32>
    %7 = arith.subf %5, %6 : vector<8x128xf32>
    %cst = arith.constant 5.000000e-01 : f32
    %8 = vector.broadcast %cst : f32 to vector<1x128xf32>
    %9 = arith.mulf %8, %3 : vector<1x128xf32>
    %10 = arith.mulf %7, %7 : vector<8x128xf32>
    %11 = vector.broadcast %9 : vector<1x128xf32> to vector<8x128xf32>
    %12 = arith.mulf %11, %10 : vector<8x128xf32>
    %c0_5 = arith.constant 0 : index
    %c0_6 = arith.constant 0 : index
    %13 = vector.load %arg5[%c0_5, %c0_6] : memref<8x128xf32, #tpu.memory_space<vmem>>, vector<8x128xf32>
    tpu.vector_store %arg5[%c0_5, %c0_6], %12 {strides = array<i32>} : memref<8x128xf32, #tpu.memory_space<vmem>>, vector<8x128xf32>,
    %c0_7 = arith.constant 0 : index
    %c0_8 = arith.constant 0 : index
    %14 = vector.load %arg3[%c0_7, %c0_8] : memref<1x128xi32, #tpu.memory_space<vmem>>, vector<1x128xi32>
    %15 = tpu.iota {dimensions = array<i32: 0>} : vector<128x128xi32>
    %16 = vector.broadcast %14 : vector<1x128xi32> to vector<128x128xi32>
    %17 = arith.cmpi eq, %15, %16 : vector<128x128xi32>
    %18 = arith.extui %17 : vector<128x128xi1> to vector<128x128xi32>
    %19 = arith.sitofp %18 : vector<128x128xi32> to vector<128x128xf32>
    %c0_9 = arith.constant 0 : index
    %c0_10 = arith.constant 0 : index
    %c0_11 = arith.constant 0 : index
    %20 = vector.load %arg6[%c0_9, %c0_10, %c0_11] : memref<1x8x128xf32, #tpu.memory_space<vmem>>, vector<1x8x128xf32>
    %21 = vector.shape_cast %20 : vector<1x8x128xf32> to vector<8x128xf32>
    %cst_12 = arith.constant dense<0.000000e+00> : vector<8x128xf32>
    %22 = tpu.matmul %12, %19, %cst_12 {dimension_numbers = #tpu.dot_dimension_numbers<[1], [1], [0], [0], [0, 0, 1, 0], [], []>} : vector<8x128xf32>, vector<128x128xf32>, vector<8x128xf32> -> vector<8x128xf32>
    %23 = arith.addf %21, %22 : vector<8x128xf32>
    %c0_13 = arith.constant 0 : index
    %c0_14 = arith.constant 0 : index
    %c0_15 = arith.constant 0 : index
    %24 = vector.load %arg6[%c0_13, %c0_14, %c0_15] : memref<1x8x128xf32, #tpu.memory_space<vmem>>, vector<1x8x128xf32>
    %25 = vector.shape_cast %24 : vector<1x8x128xf32> to vector<8x128xf32>
    %26 = vector.shape_cast %23 : vector<8x128xf32> to vector<1x8x128xf32>
    tpu.vector_store %arg6[%c0_13, %c0_14, %c0_15], %26 {strides = array<i32>} : memref<1x8x128xf32, #tpu.memory_space<vmem>>, vector<1x8x128xf32>,
    return
  }
  func.func @transform_0(%arg0: i32, %arg1: i32) -> (i32, i32) {
    %c1_i32 = arith.constant 1 : i32
    %0 = arith.muli %arg0, %c1_i32 : i32
    %1 = arith.addi %0, %arg1 : i32
    %c0_i32 = arith.constant 0 : i32
    %c0_i32_0 = arith.constant 0 : i32
    return %c0_i32, %1 : i32, i32
  }
  func.func @transform_1(%arg0: i32, %arg1: i32) -> (i32, i32) {
    %c1_i32 = arith.constant 1 : i32
    %0 = arith.muli %arg0, %c1_i32 : i32
    %1 = arith.addi %0, %arg1 : i32
    %c0_i32 = arith.constant 0 : i32
    %c0_i32_0 = arith.constant 0 : i32
    return %c0_i32, %1 : i32, i32
  }
  func.func @transform_2(%arg0: i32, %arg1: i32) -> (i32, i32) {
    %c1_i32 = arith.constant 1 : i32
    %0 = arith.muli %arg0, %c1_i32 : i32
    %1 = arith.addi %0, %arg1 : i32
    %c0_i32 = arith.constant 0 : i32
    %c0_i32_0 = arith.constant 0 : i32
    return %c0_i32, %1 : i32, i32
  }
  func.func @transform_3(%arg0: i32, %arg1: i32) -> (i32, i32) {
    %c1_i32 = arith.constant 1 : i32
    %0 = arith.muli %arg0, %c1_i32 : i32
    %1 = arith.addi %0, %arg1 : i32
    %c0_i32 = arith.constant 0 : i32
    %c0_i32_0 = arith.constant 0 : i32
    return %c0_i32, %1 : i32, i32
  }
  func.func @transform_4(%arg0: i32, %arg1: i32) -> (i32, i32, i32) {
    %c0_i32 = arith.constant 0 : i32
    %c0_i32_0 = arith.constant 0 : i32
    %c0_i32_1 = arith.constant 0 : i32
    return %arg0, %c0_i32, %c0_i32_0 : i32, i32, i32
  }
}

</mosaic_0001>

<bundles_post_ra>
// kernel: tpu_custom_call.1
= control target key start
LH: loop header
LB: loop body
LE: loop exit
PB: predicated region body
PF: predicated region fallthrough
CT: control target
= control target key end

     0   :  { %10 = vsyncpa [#allocation3], 0  ;;  %s589_s0 = inlined_call_operand.hbm [shape: f32[8,128], index: 0, kind: input, shape index: {}]   ;;  %s590_s1 = inlined_call_operand.vmem [shape: s32[1,128], index: 1, kind: input, shape index: {}]   ;;  %s591_s2 = inlined_call_operand.hbm [shape: f32[8,128], index: 2, kind: input, shape index: {}]   ;;  %s592_s3 = inlined_call_operand.hbm [shape: f32[8,128], index: 3, kind: output, shape index: {0}]   ;;  %s593_s4 = inlined_call_operand.hbm [shape: f32[1,8,128], index: 4, kind: output, shape index: {1}]  }
   0x1   :  { %11 = vsyncpa [#allocation6], 0 }
   0x2   :  { %12 = vsyncpa [#allocation4], 0 }
   0x3   :  { %13 = vsyncpa [#allocation9], 0  ;;  %s479_s15 = smov [#allocation2]   ;;  %s480_s17 = smov [#allocation5]  }
   0x4   :  { %s23_s16 = sshll.u32 %s479_s15, 4  ;;  %s43_s18 = sshll.u32 %s480_s17, 4  ;;  %s24_s16 = int_to_ptr.vmem [resolvable:$true] %s23_s16  ;;  %s44_s18 = int_to_ptr.vmem [resolvable:$true] %s43_s18 }
   0x5   :  { %s383_s21 = scalar_lea.hbm %s589_s0, 128 }
   0x6   :  { %p384_p0 = scmp.ne.s32.totalorder %s589_s0, %s383_s21  ;;  %p387_p1 = scmp.lt.u32.totalorder %s383_s21, %s589_s0 }
   0x8   :  { %p389_p2 = pnand %p387_p1, %p384_p0 }
   0xa   :  { %392 = shalt.err (!%p389_p2)
}
   0xb   :  { %s393_s26 = scalar_lea.vmem %s24_s16, 128  ;;  %p398_p4 = scmp.lt.s32.totalorder %s24_s16, %s24_s16 }
   0xc   :  { %p394_p3 = scmp.ne.s32.totalorder %s24_s16, %s393_s26  ;;  %p399_p5 = scmp.lt.s32.totalorder %s393_s26, %s393_s26 }
   0xe   :  { %p400_p6 = por %p399_p5, %p398_p4 }
  0x10   :  { %p401_p7 = pnand %p400_p6, %p394_p3 }
  0x12   :  { %404 = shalt.err (!%p401_p7)
}
  0x13   :  { %26 = dma.hbm_to_vmem [thread:$0]  %s589_s0, 128, %s24_s16, [#allocation3]  }
  0x14   :  { %s405_s5 = scalar_lea.hbm %s591_s2, 128 }
  0x15   :  { %p406_p8 = scmp.ne.s32.totalorder %s591_s2, %s405_s5  ;;  %p409_p9 = scmp.lt.u32.totalorder %s405_s5, %s591_s2 }
  0x17   :  { %p411_p10 = pnand %p409_p9, %p406_p8 }
  0x19   :  { %414 = shalt.err (!%p411_p10)
}
  0x1a   :  { %s415_s10 = scalar_lea.vmem %s44_s18, 128  ;;  %p420_p12 = scmp.lt.s32.totalorder %s44_s18, %s44_s18 }
  0x1b   :  { %p416_p11 = scmp.ne.s32.totalorder %s44_s18, %s415_s10  ;;  %p421_p13 = scmp.lt.s32.totalorder %s415_s10, %s415_s10 }
  0x1d   :  { %p422_p0 = por %p421_p13, %p420_p12 }
  0x1f   :  { %p423_p1 = pnand %p422_p0, %p416_p11 }
  0x21   :  { %426 = shalt.err (!%p423_p1)
}
  0x22   :  { %46 = dma.hbm_to_vmem [thread:$0]  %s591_s2, 128, %s44_s18, [#allocation6]  }
  0x23   :  { %471 = dma.done.wait [#allocation3], 128  }
  0x24   :  { %472 = vsyncadd [#allocation3], 4294967168 }
  0x25   :  { %473 = dma.done.wait [#allocation6], 128  }
  0x26   :  { %474 = vsyncadd [#allocation6], 4294967168  ;;  %v80_v0 = vlaneseq  ;;  %v481_v1 = vmov 0.0|0.0   ;;  %vm482_vm0 = vmmov 0   ;;  %v483_v3 = vmov 0.0   ;;  %v72_v8 = vld [vmem:[#allocation5] sm:$0xff] }
  0x27   :  { %351 = vmatprep.subr.bf16.mxu0 %v481_v1  ;;  %348 = vmatprep.mubr.msk.f32.mxu0 %vm482_vm0, %v483_v3  ;;  %v540_v5 = vld [vmem:[%s590_s1] ss:$0 sm:$0xff]  ;;  %v265_v10 = vld [vmem:[#allocation2 + $0x1] ss:$0 sm:$0xff]  ;;  %v484_v11 = vmov 1.0|1.0  }
  0x28   :  { %v81_v2 = vshrl.u32 %v80_v0, 7  ;;  %v70_v9 = vld [vmem:[#allocation2] sm:$0x1]  ;;  %v77_v12 = vsub.f32 %v72_v8, %v265_v10  ;;  %s485_s1 = smov [#allocation7]  }
  0x29   :  { %v78_v13 = vmul.f32 0.5, %v70_v9  ;;  %s238_s2 = sshll.u32 %s485_s1, 4  ;;  %s239_s2 = int_to_ptr.vmem [resolvable:$true] %s238_s2 }
  0x2a   :  { %v89_v4 = vadd.s32 8, %v81_v2  ;;  %v90_v6 = vadd.s32 16, %v81_v2  ;;  %vm108_vm1 = vcmp.eq.s32.totalorder %v81_v2, %v540_v5  ;;  %v91_v7 = vadd.s32 24, %v81_v2  ;;  %s427_s14 = scalar_lea.vmem %s239_s2, 128  ;;  %p432_p3 = scmp.lt.s32.totalorder %s239_s2, %s239_s2 }
  0x2b   :  { %v82_v14 = vsub.s32 0, %v81_v2  ;;  %v79_v15 = vmul.f32 %v77_v12, %v77_v12  ;;  %v92_v17 = vadd.s32 32, %v81_v2  ;;  %v93_v18 = vadd.s32 40, %v81_v2  ;;  %p428_p2 = scmp.ne.s32.totalorder %s239_s2, %s427_s14  ;;  %p433_p4 = scmp.lt.s32.totalorder %s427_s14, %s427_s14 }
  0x2c   :  { %vm109_vm2 = vcmp.eq.s32.totalorder %v89_v4, %v540_v5  ;;  %vm110_vm4 = vcmp.eq.s32.totalorder %v90_v6, %v540_v5  ;;  %vm111_vm5 = vcmp.eq.s32.totalorder %v91_v7, %v540_v5  ;;  %v94_v20 = vadd.s32 48, %v81_v2 }
  0x2d   :  { %vm352_vm3 = vmpackc.low %vm109_vm2, %vm108_vm1  ;;  %v83_v16 = vrot.slane %v78_v13, %v82_v14  ;;  %vm112_vm7 = vcmp.eq.s32.totalorder %v92_v17, %v540_v5  ;;  %vm113_vm8 = vcmp.eq.s32.totalorder %v93_v18, %v540_v5  ;;  %v95_v21 = vadd.s32 56, %v81_v2  ;;  %p434_p5 = por %p433_p4, %p432_p3 }
  0x2e   :  { %353 = vmatpush3.bf16.xpose.msk.msra.mxu0 %vm352_vm3, %v484_v11  ;;  %vm355_vm6 = vmpackc.low %vm111_vm5, %vm110_vm4  ;;  %vm114_vm10 = vcmp.eq.s32.totalorder %v94_v20, %v540_v5  ;;  %v96_v22 = vadd.s32 64, %v81_v2  ;;  %v97_v23 = vadd.s32 72, %v81_v2  ;;  %v98_v24 = vadd.s32 80, %v81_v2 }
  0x2f   :  { %354 = vmatprep.subr.bf16.mxu0 %v481_v1  ;;  %v84_v19 = vmul.f32 %v83_v16, %v79_v15  ;;  %vm358_vm9 = vmpackc.low %vm113_vm8, %vm112_vm7  ;;  %vm115_vm11 = vcmp.eq.s32.totalorder %v95_v21, %v540_v5  ;;  %v99_v25 = vadd.s32 88, %v81_v2  ;;  %v100_v26 = vadd.s32 96, %v81_v2  ;;  %p435_p6 = pnand %p434_p5, %p428_p2 }
  0x30   :  { %vm361_vm12 = vmpackc.low %vm115_vm11, %vm114_vm10  ;;  %vm116_vm13 = vcmp.eq.s32.totalorder %v96_v22, %v540_v5  ;;  %vm117_vm14 = vcmp.eq.s32.totalorder %v97_v23, %v540_v5  ;;  %vm118_vm0 = vcmp.eq.s32.totalorder %v98_v24, %v540_v5  ;;  %v101_v27 = vadd.s32 104, %v81_v2 }
  0x31   :  { %85 = vst [vmem:[#allocation7] sm:$0xff] %v84_v19  ;;  %vm364_vm15 = vmpackc.low %vm117_vm14, %vm116_vm13  ;;  %vm119_vm1 = vcmp.eq.s32.totalorder %v99_v25, %v540_v5  ;;  %vm120_vm3 = vcmp.eq.s32.totalorder %v100_v26, %v540_v5  ;;  %v102_v28 = vadd.s32 112, %v81_v2  ;;  %v103_v29 = vadd.s32 120, %v81_v2 }
  0x32   :  { %vm367_vm2 = vmpackc.low %vm119_vm1, %vm118_vm0  ;;  %vm121_vm4 = vcmp.eq.s32.totalorder %v101_v27, %v540_v5 }
  0x33   :  { %vm370_vm5 = vmpackc.low %vm121_vm4, %vm120_vm3  ;;  %vm123_vm7 = vcmp.eq.s32.totalorder %v103_v29, %v540_v5 }
  0x36   :  { %356 = vmatpush3.bf16.xpose.msk.msra.mxu0 %vm355_vm6, %v484_v11  ;;  %vm122_vm6 = vcmp.eq.s32.totalorder %v102_v28, %v540_v5 }
  0x37   :  { %357 = vmatprep.subr.bf16.mxu0 %v481_v1  ;;  %vm373_vm8 = vmpackc.low %vm123_vm7, %vm122_vm6 }
  0x3e   :  { %359 = vmatpush3.bf16.xpose.msk.msra.mxu0 %vm358_vm9, %v484_v11 }
  0x3f   :  { %360 = vmatprep.subr.bf16.mxu0 %v481_v1 }
  0x46   :  { %362 = vmatpush3.bf16.xpose.msk.msra.mxu0 %vm361_vm12, %v484_v11 }
  0x47   :  { %363 = vmatprep.subr.bf16.mxu0 %v481_v1 }
  0x4e   :  { %365 = vmatpush3.bf16.xpose.msk.msra.mxu0 %vm364_vm15, %v484_v11 }
  0x4f   :  { %366 = vmatprep.subr.bf16.mxu0 %v481_v1 }
  0x56   :  { %368 = vmatpush3.bf16.xpose.msk.msra.mxu0 %vm367_vm2, %v484_v11 }
  0x57   :  { %369 = vmatprep.subr.bf16.mxu0 %v481_v1 }
  0x5e   :  { %371 = vmatpush3.bf16.xpose.msk.msra.mxu0 %vm370_vm5, %v484_v11 }
  0x5f   :  { %372 = vmatprep.subr.bf16.mxu0 %v481_v1 }
  0x66   :  { %374 = vmatpush3.bf16.xpose.msk.msra.mxu0 %vm373_vm8, %v484_v11 }
  0x6d   :  { %349 = vmatmul.mubr.f32.vlgmr.msra.gmra.mrb[0].mxu0 %v84_v19 }
  0x6e   :  { %438 = shalt.err (!%p435_p6)
}
  0x6f   :  { %s439_s17 = scalar_lea.hbm %s592_s3, 128 }
  0x70   :  { %p440_p7 = scmp.ne.s32.totalorder %s592_s3, %s439_s17  ;;  %p443_p8 = scmp.lt.u32.totalorder %s439_s17, %s592_s3 }
  0x72   :  { %p445_p9 = pnand %p443_p8, %p440_p7 }
  0x74   :  { %448 = shalt.err (!%p445_p9)
}
  0x75   :  { %241 = dma.vmem_to_hbm [thread:$0]  %s239_s2, 128, %s592_s3, [#allocation4]  }
  0x76   :  { %s486_s24 = smov [#allocation8]  }
  0x77   :  { %s248_s25 = sshll.u32 %s486_s24, 4  ;;  %s249_s25 = int_to_ptr.vmem [resolvable:$true] %s248_s25 }
  0x78   :  { %s449_s26 = scalar_lea.vmem %s249_s25, 128  ;;  %p454_p11 = scmp.lt.s32.totalorder %s249_s25, %s249_s25 }
  0x79   :  { %p450_p10 = scmp.ne.s32.totalorder %s249_s25, %s449_s26  ;;  %p455_p12 = scmp.lt.s32.totalorder %s449_s26, %s449_s26 }
  0x7b   :  { %p456_p13 = por %p455_p12, %p454_p11 }
  0x7d   :  { %p457_p0 = pnand %p456_p13, %p450_p10 }
 0x140   :  { %v223_v30 = vpop.f32.mrb[0].mxu0 }
 0x141   :  { %v350_v31 = vpop.f32.mrb[1].mxu0  ;;  %228 = vst [vmem:[#allocation8] sm:$0xff] %v223_v30 }
 0x142   :  { %460 = shalt.err (!%p457_p0)
}
 0x143   :  { %s461_s29 = scalar_lea.hbm %s593_s4, 128 }
 0x144   :  { %p462_p1 = scmp.ne.s32.totalorder %s593_s4, %s461_s29  ;;  %p465_p2 = scmp.lt.u32.totalorder %s461_s29, %s593_s4 }
 0x146   :  { %p467_p3 = pnand %p465_p2, %p462_p1 }
 0x148   :  { %470 = shalt.err (!%p467_p3)
}
 0x149   :  { %251 = dma.vmem_to_hbm [thread:$0]  %s249_s25, 128, %s593_s4, [#allocation9]  }
 0x14a   :  { %475 = dma.done.wait [#allocation4], 128  }
 0x14b   :  { %476 = vsyncadd [#allocation4], 4294967168 }
 0x14c   :  { %477 = dma.done.wait [#allocation9], 128  }
 0x14d   :  { %478 = vsyncadd [#allocation9], 4294967168 }
 0x14e   :  { %258 = vsyncpa [#allocation3], 1 }
 0x14f   :  { %259 = vsyncpa [#allocation6], 1 }
 0x150   :  { %260 = vsyncpa [#allocation4], 1 }
 0x151   :  { %261 = vsyncpa [#allocation9], 1 }

</bundles_post_ra>
